<compile_context>
chip_gen: v5e
topology: v5e:2x2
jax: 0.10.0
libtpu: 0.0.40
codegen_flags: <defaults>
</compile_context>

<pallas_src>
import functools

import jax
import jax.numpy as jnp
from jax.experimental import pallas as pl
from jax.experimental.pallas import tpu as pltpu

_PAIRWISE_EPS = 1e-6                 # torch F.pairwise_distance default eps
_TARGET_TILE_BYTES = 8 << 20         # fresh o1+o2 bytes per grid step
_RESIDENT_LABEL_MAX_ROWS = 4096      # (rows,1) f32 block is ~512 B/row in VMEM
_NUM_CORE_SPLITS = 2                 # v7x has 2 TensorCores; no-op on v5e/v6e


def _round_up(x, m):
    return ((x + m - 1) // m) * m


def _vmem_limit_bytes():
    cap = 64 << 20  # conservative fallback = v7x physical VMEM per TC
    try:
        info = pltpu.get_tpu_info()
        cap = int(getattr(info, "vmem_capacity_bytes", cap))
    except Exception:
        pass
    return (cap // 4) * 3  # 96 MiB on 128-MiB parts, 48 MiB on v7x


def _choose_tile_rows(B, D, itemsize, vmem_limit):
    """Largest batch tile that hits the HBM roofline and fits scoped VMEM."""
    hbm_row_bytes = 2 * D * itemsize                       # o1 + o2, one row
    vmem_row_bytes = 2 * _round_up(D, 128) * itemsize      # lane-padded layout
    # double-buffered inputs must fit in ~80% of the scoped VMEM limit
    vmem_rows = int(vmem_limit * 0.8) // (2 * vmem_row_bytes)
    target_rows = _TARGET_TILE_BYTES // hbm_row_bytes
    tile = max(8, min(vmem_rows, target_rows))
    tile = max(8, (tile // 8) * 8)
    return tile


def _contrastive_loss_kernel(o1_ref, o2_ref, lab_ref, out_ref, *,
                             margin, batch, tile_b, tiles_per_core,
                             num_tiles, label_resident, need_mask):
    i = pl.program_id(1)

    # Per-core partial sum lives in the resident output block.
    @pl.when(i == 0)
    def _():
        out_ref[...] = jnp.zeros_like(out_ref)

    # Nominal global tile id (may point past the last real tile on the last
    # core -> "phantom" slot; its data is clamped to tile num_tiles-1 by the
    # index_map and its contribution is fully masked below).
    g_raw = pl.program_id(0) * tiles_per_core + i

    o1 = o1_ref[...].astype(jnp.float32)        # (TB, D), upcast on the VPU
    o2 = o2_ref[...].astype(jnp.float32)        # (TB, D)

    if label_resident:
        g_safe = jnp.minimum(g_raw, num_tiles - 1)
        row0 = pl.multiple_of(g_safe * tile_b, 8)
        lab = lab_ref[pl.ds(row0, tile_b), :].astype(jnp.float32)   # (TB, 1)
    else:
        lab = lab_ref[...].astype(jnp.float32)                       # (TB, 1)

    diff = o1 - o2 + jnp.float32(_PAIRWISE_EPS)
    sumsq = jnp.sum(diff * diff, axis=-1, keepdims=True)   # (TB, 1) == d^2
    dist = jnp.sqrt(sumsq)                                  # euclidean distance
    hinge = jnp.maximum(jnp.float32(margin) - dist, 0.0)
    per_row = (1.0 - lab) * sumsq + lab * (hinge * hinge)   # (TB, 1)

    if need_mask:
        # Only tiles whose nominal row range crosses the end of the batch pay
        # for the iota/compare/select (last partial tile + phantom slots).
        row_start = g_raw * tile_b

        @pl.when(row_start + tile_b > batch)
        def _():
            rows = (jax.lax.broadcasted_iota(jnp.int32, per_row.shape, 0)
                    + row_start)
            masked = jnp.where(rows < batch, per_row, 0.0)
            out_ref[...] += jnp.sum(masked, keepdims=True)

        @pl.when(row_start + tile_b <= batch)
        def _():
            out_ref[...] += jnp.sum(per_row, keepdims=True)
    else:
        out_ref[...] += jnp.sum(per_row, keepdims=True)


def contrastive_loss(output1, output2, label, margin=1.0, *, block_rows=None):
    """Pallas TPU implementation of ContrastiveLoss.forward."""
    B, D = output1.shape
    assert output2.shape == (B, D)

    itemsize = max(output1.dtype.itemsize, output2.dtype.itemsize)
    vmem_limit = _vmem_limit_bytes()

    if block_rows is None:
        tile_b = _choose_tile_rows(B, D, itemsize, vmem_limit)
    else:
        tile_b = int(block_rows)
    tile_b = min(tile_b, B)
    if tile_b < B:
        tile_b = max(8, (tile_b // 8) * 8)

    num_tiles = -(-B // tile_b)
    splits = _NUM_CORE_SPLITS if num_tiles >= 2 else 1
    tiles_per_core = -(-num_tiles // splits)
    total_slots = splits * tiles_per_core
    need_mask = (total_slots * tile_b) != B

    # Label as an (b_pad, 1) f32 column, zero-padded so every (possibly
    # clamped) tile slice is in-bounds. Tiny array, cheap wrapper-side pad.
    b_pad = num_tiles * tile_b
    label2d = jnp.asarray(label, jnp.float32).reshape(B, 1)
    if b_pad > B:
        label2d = jnp.pad(label2d, ((0, b_pad - B), (0, 0)))
    label_resident = b_pad <= _RESIDENT_LABEL_MAX_ROWS

    def data_map(c, i):
        g = jnp.minimum(c * tiles_per_core + i, num_tiles - 1)
        return (g, 0)

    if label_resident:
        lab_spec = pl.BlockSpec((b_pad, 1), lambda c, i: (0, 0))  # loaded once
    else:
        lab_spec = pl.BlockSpec((tile_b, 1), data_map)

    cost = pl.CostEstimate(
        flops=4 * B * D + 8 * B,
        transcendentals=B,
        bytes_accessed=(output1.size * output1.dtype.itemsize
                        + output2.size * output2.dtype.itemsize
                        + label2d.size * 4 + splits * 4))

    partial = pl.pallas_call(
        functools.partial(
            _contrastive_loss_kernel,
            margin=float(margin), batch=B, tile_b=tile_b,
            tiles_per_core=tiles_per_core, num_tiles=num_tiles,
            label_resident=label_resident, need_mask=need_mask),
        out_shape=jax.ShapeDtypeStruct((splits, 1), jnp.float32),
        grid=(splits, tiles_per_core),
        in_specs=[
            pl.BlockSpec((tile_b, D), data_map),   # output1 tile (native dtype)
            pl.BlockSpec((tile_b, D), data_map),   # output2 tile (native dtype)
            lab_spec,                              # label (resident or tiled)
        ],
        out_specs=pl.BlockSpec((1, 1), lambda c, i: (c, 0)),  # per-core partial
        compiler_params=pltpu.CompilerParams(
            dimension_semantics=("parallel", "arbitrary"),
            vmem_limit_bytes=int(vmem_limit)),
        cost_estimate=cost,
    )(output1, output2, label2d)

    return jnp.sum(partial) / B


def _reference(output1, output2, label, margin=1.0):
    o1 = output1.astype(jnp.float32)
    o2 = output2.astype(jnp.float32)
    lab = label.astype(jnp.float32)
    diff = o1 - o2 + _PAIRWISE_EPS
    dist = jnp.sqrt(jnp.sum(diff * diff, axis=-1))
    return jnp.mean((1.0 - lab) * dist ** 2
                    + lab * jnp.maximum(margin - dist, 0.0) ** 2)


if __name__ == "__main__":
    key = jax.random.PRNGKey(0)
    keys = jax.random.split(key, 9)

    # 1) Small f32 case (single tile, no masking, resident label).
    B, D = 8, 32
    o1 = jax.random.normal(keys[0], (B, D), dtype=jnp.float32)
    o2 = jax.random.normal(keys[1], (B, D), dtype=jnp.float32)
    lab = jax.random.bernoulli(keys[2], 0.5, (B,)).astype(jnp.float32)
    loss = jax.block_until_ready(contrastive_loss(o1, o2, lab, margin=1.0))
    ref = _reference(o1, o2, lab, margin=1.0)
    assert jnp.allclose(loss, ref, rtol=1e-5, atol=1e-6), (loss, ref)

    # 2) bf16 case forcing the batch grid: 2-way core split, resident label,
    #    partial last tile + one phantom grid slot (both masked).
    B2, D2 = 520, 128
    o1b = jax.random.normal(keys[3], (B2, D2), dtype=jnp.bfloat16)
    o2b = jax.random.normal(keys[4], (B2, D2), dtype=jnp.bfloat16)
    labb = jax.random.bernoulli(keys[5], 0.5, (B2,)).astype(jnp.float32)
    loss2 = jax.block_until_ready(
        contrastive_loss(o1b, o2b, labb, margin=1.0, block_rows=64))
    ref2 = _reference(o1b, o2b, labb, margin=1.0)
    assert jnp.allclose(loss2, ref2, rtol=1e-4, atol=1e-4), (loss2, ref2)

    # 3) bf16 case exercising the tiled-label fallback (batch > resident cap).
    B3, D3 = 4160, 64
    o1c = jax.random.normal(keys[6], (B3, D3), dtype=jnp.bfloat16)
    o2c = jax.random.normal(keys[7], (B3, D3), dtype=jnp.bfloat16)
    labc = jax.random.bernoulli(keys[8], 0.5, (B3,)).astype(jnp.float32)
    loss3 = jax.block_until_ready(
        contrastive_loss(o1c, o2c, labc, margin=1.0, block_rows=64))
    ref3 = _reference(o1c, o2c, labc, margin=1.0)
    assert jnp.allclose(loss3, ref3, rtol=1e-4, atol=1e-4), (loss3, ref3)

    print("KERNEL_OK")
</pallas_src>

<mosaic_0001>
module attributes {stable_mosaic.version = 11 : i64} {
  func.func @_contrastive_loss_kernel(%arg0: i32, %arg1: i32, %arg2: memref<8x32xf32, #tpu.memory_space<vmem>>, %arg3: memref<8x32xf32, #tpu.memory_space<vmem>>, %arg4: memref<8x1xf32, #tpu.memory_space<vmem>>, %arg5: memref<1x1xf32, #tpu.memory_space<vmem>>) attributes {dimension_semantics = [#tpu.dimension_semantics<parallel>, #tpu.dimension_semantics<arbitrary>], iteration_bounds = array<i64: 1, 1>, scalar_prefetch = 0 : i64, scratch_operands = 0 : i64, tpu.core_type = #tpu.core_type<tc>, window_params = [{transform_indices = @transform_0, window_bounds = array<i64: 8, 32>}, {transform_indices = @transform_1, window_bounds = array<i64: 8, 32>}, {pipeline_mode = #tpu.pipeline_mode<synchronous>, transform_indices = @transform_2, window_bounds = array<i64: 8, 1>}, {transform_indices = @transform_3, window_bounds = array<i64: 1, 1>}]} {
    %c0_i32 = arith.constant 0 : i32
    %0 = arith.cmpi eq, %arg1, %c0_i32 : i32
    %1 = arith.extui %0 : i1 to i32
    %c0_i32_0 = arith.constant 0 : i32
    %2 = arith.cmpi ne, %1, %c0_i32_0 : i32
    scf.if %2 {
      %cst_15 = arith.constant 0.000000e+00 : f32
      %37 = vector.broadcast %cst_15 : f32 to vector<1x1xf32>
      %c0_16 = arith.constant 0 : index
      %c0_17 = arith.constant 0 : index
      %38 = vector.load %arg5[%c0_16, %c0_17] : memref<1x1xf32, #tpu.memory_space<vmem>>, vector<1x1xf32>
      tpu.vector_store %arg5[%c0_16, %c0_17], %37 {strides = array<i32>} : memref<1x1xf32, #tpu.memory_space<vmem>>, vector<1x1xf32>,
    } else {
    }
    %c1_i32 = arith.constant 1 : i32
    %3 = arith.muli %arg0, %c1_i32 : i32
    %4 = arith.addi %3, %arg1 : i32
    %c0 = arith.constant 0 : index
    %c0_1 = arith.constant 0 : index
    %5 = vector.load %arg2[%c0, %c0_1] : memref<8x32xf32, #tpu.memory_space<vmem>>, vector<8x32xf32>
    %c0_2 = arith.constant 0 : index
    %c0_3 = arith.constant 0 : index
    %6 = vector.load %arg3[%c0_2, %c0_3] : memref<8x32xf32, #tpu.memory_space<vmem>>, vector<8x32xf32>
    %c0_i32_4 = arith.constant 0 : i32
    %7 = arith.minsi %4, %c0_i32_4 : i32
    %c8_i32 = arith.constant 8 : i32
    %8 = arith.muli %7, %c8_i32 : i32
    %9 = tpu.assume_multiple %8, 8 : i32
    %10 = arith.index_cast %9 : i32 to index
    %c0_5 = arith.constant 0 : index
    %11 = vector.load %arg4[%10, %c0_5] : memref<8x1xf32, #tpu.memory_space<vmem>>, vector<8x1xf32>
    %12 = arith.subf %5, %6 : vector<8x32xf32>
    %cst = arith.constant 9.99999997E-7 : f32
    %13 = vector.broadcast %cst : f32 to vector<8x32xf32>
    %14 = arith.addf %12, %13 : vector<8x32xf32>
    %15 = arith.mulf %14, %14 : vector<8x32xf32>
    %cst_6 = arith.constant dense<0.000000e+00> : vector<8xf32>
    %16 = vector.multi_reduction <add>, %15, %cst_6 [1] : vector<8x32xf32> to vector<8xf32>
    %17 = vector.shape_cast %16 : vector<8xf32> to vector<8x1xf32>
    %18 = math.sqrt %17 : vector<8x1xf32>
    %cst_7 = arith.constant 1.000000e+00 : f32
    %19 = vector.broadcast %cst_7 : f32 to vector<8x1xf32>
    %20 = arith.subf %19, %18 : vector<8x1xf32>
    %cst_8 = arith.constant 0.000000e+00 : f32
    %21 = vector.broadcast %cst_8 : f32 to vector<8x1xf32>
    %22 = arith.maximumf %20, %21 : vector<8x1xf32>
    %cst_9 = arith.constant 1.000000e+00 : f32
    %23 = vector.broadcast %cst_9 : f32 to vector<8x1xf32>
    %24 = arith.subf %23, %11 : vector<8x1xf32>
    %25 = arith.mulf %24, %17 : vector<8x1xf32>
    %26 = arith.mulf %22, %22 : vector<8x1xf32>
    %27 = arith.mulf %11, %26 : vector<8x1xf32>
    %28 = arith.addf %25, %27 : vector<8x1xf32>
    %c0_10 = arith.constant 0 : index
    %c0_11 = arith.constant 0 : index
    %29 = vector.load %arg5[%c0_10, %c0_11] : memref<1x1xf32, #tpu.memory_space<vmem>>, vector<1x1xf32>
    %30 = vector.shape_cast %28 : vector<8x1xf32> to vector<1x8x1xf32>
    %cst_12 = arith.constant dense<0.000000e+00> : vector<1xf32>
    %31 = vector.multi_reduction <add>, %30, %cst_12 [1, 2] : vector<1x8x1xf32> to vector<1xf32>
    %32 = vector.shape_cast %31 : vector<1xf32> to vector<1x1x1xf32>
    %33 = vector.extract %32[0, 0, 0] : f32 from vector<1x1x1xf32>
    %34 = vector.broadcast %33 : f32 to vector<1x1xf32>
    %35 = arith.addf %29, %34 : vector<1x1xf32>
    %c0_13 = arith.constant 0 : index
    %c0_14 = arith.constant 0 : index
    %36 = vector.load %arg5[%c0_13, %c0_14] : memref<1x1xf32, #tpu.memory_space<vmem>>, vector<1x1xf32>
    tpu.vector_store %arg5[%c0_13, %c0_14], %35 {strides = array<i32>} : memref<1x1xf32, #tpu.memory_space<vmem>>, vector<1x1xf32>,
    return
  }
  func.func @transform_0(%arg0: i32, %arg1: i32) -> (i32, i32) {
    %c1_i32 = arith.constant 1 : i32
    %0 = arith.muli %arg0, %c1_i32 : i32
    %1 = arith.addi %0, %arg1 : i32
    %c0_i32 = arith.constant 0 : i32
    %2 = arith.minsi %1, %c0_i32 : i32
    %c0_i32_0 = arith.constant 0 : i32
    %c0_i32_1 = arith.constant 0 : i32
    return %2, %c0_i32_0 : i32, i32
  }
  func.func @transform_1(%arg0: i32, %arg1: i32) -> (i32, i32) {
    %c1_i32 = arith.constant 1 : i32
    %0 = arith.muli %arg0, %c1_i32 : i32
    %1 = arith.addi %0, %arg1 : i32
    %c0_i32 = arith.constant 0 : i32
    %2 = arith.minsi %1, %c0_i32 : i32
    %c0_i32_0 = arith.constant 0 : i32
    %c0_i32_1 = arith.constant 0 : i32
    return %2, %c0_i32_0 : i32, i32
  }
  func.func @transform_2(%arg0: i32, %arg1: i32) -> (i32, i32) {
    %c0_i32 = arith.constant 0 : i32
    %c0_i32_0 = arith.constant 0 : i32
    %c0_i32_1 = arith.constant 0 : i32
    return %c0_i32, %c0_i32_0 : i32, i32
  }
  func.func @transform_3(%arg0: i32, %arg1: i32) -> (i32, i32) {
    %c0_i32 = arith.constant 0 : i32
    %c0_i32_0 = arith.constant 0 : i32
    return %arg0, %c0_i32 : i32, i32
  }
}

</mosaic_0001>

<bundles_post_ra>
// kernel: tpu_custom_call.1
= control target key start
LH: loop header
LB: loop body
LE: loop exit
PB: predicated region body
PF: predicated region fallthrough
CT: control target
= control target key end

     0   :  { %8 = vsyncpa [#allocation3], 0  ;;  %s243_s0 = inlined_call_operand.vmem [shape: f32[8,32], index: 0, kind: input, shape index: {}]   ;;  %s244_s1 = inlined_call_operand.hbm [shape: f32[8,32], index: 1, kind: input, shape index: {}]   ;;  %s245_s2 = inlined_call_operand.vmem [shape: f32[8,1], index: 2, kind: input, shape index: {}]   ;;  %s246_s3 = inlined_call_operand.hbm [shape: f32[1,1], index: 3, kind: output, shape index: {}]  }
   0x1   :  { %9 = vsyncpa [#allocation4], 0  ;;  %s32_s14 = sshll.u32 %s244_s1, 4  ;;  %s206_s15 = smov [#allocation2]   ;;  %s33_s14 = int_to_ptr.hbm [resolvable:$true] %s32_s14 }
   0x2   :  { %s34_s16 = sshll.u32 %s206_s15, 4  ;;  %s35_s16 = int_to_ptr.vmem [resolvable:$true] %s34_s16 }
   0x3   :  { %37 = dma.hbm_to_vmem [thread:$0]  %s33_s14, 128, %s35_s16, [#allocation3]  }
   0x4   :  { %202 = dma.done.wait [#allocation3], 128  }
   0x5   :  { %203 = vsyncadd [#allocation3], 4294967168  ;;  %vm68_vm0 = vcmask 0   ;;  %v207_v0 = vmov 0.0   ;;  %v71_v1 = vld [vmem:[%s243_s0] sm:$0xff]  ;;  %vm81_vm1 = vcmask 261120  }
   0x6   :  { %69 = vst.msk [vmem:[#allocation5] sm:$0x1] %vm68_vm0, %v207_v0  ;;  %v72_v2 = vld [vmem:[#allocation2] sm:$0xff]  ;;  %vm105_vm4 = vcmask 7168   ;;  %s127_s22 = sshll.u32 %s246_s3, 4  ;;  %s128_s22 = int_to_ptr.hbm [resolvable:$true] %s127_s22 }
   0x7   :  { %v78_v3 = vsub.f32 %v71_v1, %v72_v2  ;;  %v77_v17 = vld [vmem:[%s245_s2] sm:$0xff]  ;;  %s208_s2 = smov [#allocation5]  }
   0x8   :  { %v99_v21 = vsub.f32 1.0, %v77_v17  ;;  %s125_s19 = sshll.u32 %s208_s2, 4  ;;  %s126_s19 = int_to_ptr.vmem [resolvable:$true] %s125_s19 }
   0x9   :  { %v79_v4 = vadd.f32 1e-06, %v78_v3 }
   0xb   :  { %v80_v5 = vmul.f32 %v79_v4, %v79_v4 }
   0xd   :  { %v82_v6 = vsel %vm81_vm1, %v80_v5, 0.0  ;;  %v104_v34 = vld [vmem:[#allocation5] sm:$0x1] }
   0xe   :  { %83 = vadd.xlane.f32.xlu0 %v82_v6 }
  0x81   :  { %v84_v7 = vpop.xlane.xlu0 %83 }
  0x82   :  { %152 = vrsqrt.f32 %v84_v7  ;;  %vm92_vm2 = vcmp.eq.f32.partialorder %v84_v7, inf  ;;  %v95_v15 = vand.u32 2147483648, %v84_v7  ;;  %vm94_vm3 = vcmp.eq.f32.partialorder %v84_v7, 0.0 }
  0x83   :  { %v100_v23 = vmul.f32 %v99_v21, %v84_v7 }
  0x88   :  { %v153_v8 = vpop.eup %152 }
  0x89   :  { %v86_v9 = vmul.f32 %v153_v8, %v84_v7 }
  0x8b   :  { %v87_v10 = vmul.f32 %v153_v8, %v86_v9 }
  0x8d   :  { %v88_v11 = vmul.f32 0.5, %v87_v10 }
  0x8f   :  { %v89_v12 = vsub.f32 1.5, %v88_v11 }
  0x91   :  { %v90_v13 = vmul.f32 %v153_v8, %v89_v12 }
  0x93   :  { %v91_v14 = vmul.f32 %v90_v13, %v84_v7 }
  0x95   :  { %v93_v16 = vsel %vm92_vm2, %v84_v7, %v91_v14 }
  0x96   :  { %v96_v18 = vsel %vm94_vm3, %v95_v15, %v93_v16 }
  0x97   :  { %v97_v19 = vsub.f32 1.0, %v96_v18 }
  0x99   :  { %v98_v20 = vmax.f32 %v97_v19, 0.0 }
  0x9b   :  { %v101_v22 = vmul.f32 %v98_v20, %v98_v20 }
  0x9d   :  { %v102_v24 = vmul.f32 %v101_v22, %v77_v17 }
  0x9f   :  { %v103_v25 = vadd.f32 %v102_v24, %v100_v23 }
  0xa1   :  { %v106_v26 = vsel %vm105_vm4, %v103_v25, 0.0 }
  0xa2   :  { %107 = vadd.xlane.f32.xlu0 %v106_v26 }
 0x115   :  { %v108_v27 = vpop.xlane.xlu0 %107 }
 0x116   :  { %v109_v28 = vrot.slane %v108_v27, 4 }
 0x118   :  { %v110_v29 = vadd.f32 %v109_v28, %v108_v27 }
 0x11a   :  { %v111_v30 = vrot.slane %v110_v29, 2 }
 0x11c   :  { %v112_v31 = vadd.f32 %v111_v30, %v110_v29 }
 0x11e   :  { %v113_v32 = vrot.slane %v112_v31, 1 }
 0x120   :  { %v114_v33 = vadd.f32 %v113_v32, %v112_v31 }
 0x122   :  { %147 = vpush %v114_v33 }
 0x153   :  { %s148_s23 = spop %147 }
 0x154   :  { %v116_v35 = vstv %s148_s23 }
 0x155   :  { %v117_v36 = vadd.f32 %v116_v35, %v104_v34 }
 0x157   :  { %119 = vst.msk [vmem:[#allocation5] sm:$0x1] %vm68_vm0, %v117_v36 }
 0x158   :  { %130 = dma.vmem_to_hbm [thread:$0]  %s126_s19, 16, %s128_s22, [#allocation4]  }
 0x159   :  { %204 = dma.done.wait [#allocation4], 16  }
 0x15a   :  { %205 = vsyncadd [#allocation4], 4294967280 }
 0x15b   :  { %135 = vsyncpa [#allocation3], 1 }
 0x15c   :  { %136 = vsyncpa [#allocation4], 1 }

</bundles_post_ra>
